<compile_context>
chip_gen: v7x
topology: tpu7x:2x2x1
jax: 0.10.0
libtpu: 0.0.40
codegen_flags: <defaults>
</compile_context>

<pallas_src>
import functools

import jax
import jax.numpy as jnp
from jax.experimental import pallas as pl
from jax.experimental.pallas import tpu as pltpu


def lstm_kernel(xp_ref, h0_ref, c0_ref, wh_ref,
                out_ref, hT_ref, cT_ref,
                h_sc, c_sc, *, seq_len, chunk, hidden, group):
    """One grid step == `chunk` timesteps of the LSTM recurrence.

    xp_ref : (chunk, B, 4H) f32   precomputed Emb[token] @ Wx + b, time-major
    h0_ref : (B, H) f32           initial hidden state
    c0_ref : (B, H) f32           initial cell state
    wh_ref : (H, 4H) bf16         fused hidden->gate weights (i|f|g|o), resident
    out_ref: (chunk//group, B, group*H) f32  `group` timesteps packed per lane row
    hT_ref : (B, H) f32           final hidden state (written on last step only)
    cT_ref : (B, H) f32           final cell state   (written on last step only)
    h_sc, c_sc : (B, H) f32       VMEM scratch carrying state across grid steps
    """
    t = pl.program_id(0)
    H = hidden
    n_groups = chunk // group
    needs_mask = (seq_len % chunk) != 0          # static: only trace mask if padded

    @pl.when(t == 0)
    def _():
        h_sc[...] = h0_ref[...]
        c_sc[...] = c0_ref[...]

    wh = wh_ref[...]                              # (H, 4H) bf16

    def cell(step, h, c):
        # Only the recurrent matmul remains on the serial critical path.
        pre = xp_ref[step] + jnp.dot(h.astype(jnp.bfloat16), wh,
                                     preferred_element_type=jnp.float32)   # (B, 4H)
        # Whole-vreg transcendentals: 2 EUP dispatches per step instead of 4.
        sg = jax.nn.sigmoid(pre)
        th = jnp.tanh(pre)
        i_t = sg[:, 0 * H:1 * H]
        f_t = sg[:, 1 * H:2 * H]
        g_t = th[:, 2 * H:3 * H]
        o_t = sg[:, 3 * H:4 * H]
        c_new = f_t * c + i_t * g_t
        h_new = o_t * jnp.tanh(c_new)
        if needs_mask:
            # Padded tail timesteps: freeze the carried state (arith blend on a
            # broadcast scalar -- robust lowering, negligible cost).
            valid = ((t * chunk + step) < seq_len).astype(jnp.float32)
            c_new = valid * c_new + (1.0 - valid) * c
            h_new = valid * h_new + (1.0 - valid) * h
        return h_new, c_new

    def group_body(g):
        # `group` timesteps statically unrolled; their hidden states are packed
        # into one lane-dense (B, group*H) row -> one unmasked 128-lane store.
        h = h_sc[...]
        c = c_sc[...]
        hs = []
        for k in range(group):
            h, c = cell(g * group + k, h, c)
            hs.append(h)
        out_ref[g] = jnp.concatenate(hs, axis=-1) if group > 1 else hs[0]
        h_sc[...] = h
        c_sc[...] = c

    if n_groups <= 8:
        for g in range(n_groups):                 # small chunk: fully static unroll
            group_body(g)
    else:
        # Long chunk: bounded in-kernel loop; each iteration still statically
        # unrolls `group` timesteps (amortizes loop overhead, bounds trace size).
        pl.loop(0, n_groups)(group_body)

    @pl.when(t == pl.num_programs(0) - 1)
    def _():
        hT_ref[...] = h_sc[...]
        cT_ref[...] = c_sc[...]


def lstm_pallas(xp, h0, c0, wh, *, chunk=None):
    """xp: (S, B, 4H) f32 time-major precomputed input projections (bias folded in);
       h0/c0: (B, H) f32; wh: (H, 4H) bf16."""
    S, B, G4 = xp.shape
    H = h0.shape[-1]
    assert G4 == 4 * H and wh.shape == (H, 4 * H)

    if chunk is None:
        chunk = min(64, 8 * pl.cdiv(S, 8))        # bounded in-kernel unroll / loop
    assert chunk % 8 == 0

    # Lane-dense output packing: `group` consecutive timesteps per 128-lane row.
    if H % 128 == 0:
        group = 1                                  # already lane dense
    elif 128 % H == 0 and chunk % (128 // H) == 0:
        group = 128 // H
    else:
        group = 1                                  # fallback: masked stores

    n_chunks = pl.cdiv(S, chunk)
    S_pad = n_chunks * chunk
    if S_pad != S:
        xp = jnp.pad(xp, ((0, S_pad - S), (0, 0), (0, 0)))

    grid_spec = pltpu.PrefetchScalarGridSpec(
        num_scalar_prefetch=0,
        grid=(n_chunks,),
        in_specs=[
            pl.BlockSpec((chunk, B, 4 * H), lambda t: (t, 0, 0)),    # xp chunk
            pl.BlockSpec((B, H), lambda t: (0, 0)),                  # h0
            pl.BlockSpec((B, H), lambda t: (0, 0)),                  # c0
            pl.BlockSpec((H, 4 * H), lambda t: (0, 0)),              # Wh (resident)
        ],
        out_specs=[
            pl.BlockSpec((chunk // group, B, group * H), lambda t: (t, 0, 0)),
            pl.BlockSpec((B, H), lambda t: (0, 0)),                  # hT
            pl.BlockSpec((B, H), lambda t: (0, 0)),                  # cT
        ],
        scratch_shapes=[pltpu.VMEM((B, H), jnp.float32),
                        pltpu.VMEM((B, H), jnp.float32)],
    )

    kernel = functools.partial(lstm_kernel, seq_len=S, chunk=chunk,
                               hidden=H, group=group)

    out_packed, hT, cT = pl.pallas_call(
        kernel,
        out_shape=(
            jax.ShapeDtypeStruct((S_pad // group, B, group * H), jnp.float32),
            jax.ShapeDtypeStruct((B, H), jnp.float32),
            jax.ShapeDtypeStruct((B, H), jnp.float32),
        ),
        grid_spec=grid_spec,
        compiler_params=pltpu.CompilerParams(
            # Time recurrence is inherently sequential. No vmem_limit override:
            # resident footprint is ~100 KiB, far under every chip's default.
            dimension_semantics=("arbitrary",)),
    )(xp, h0, c0, wh)

    # Unpack (S_pad//group, B, group*H) -> (B, S, H); cheap layout-only XLA ops
    # (mirrors the torch code's final output.transpose(0, 1)).
    out = jnp.transpose(out_packed, (1, 0, 2)).reshape(B, S_pad, H)[:, :S, :]
    return out, (hT[None], cT[None])


def encoder_forward(tokens, hidden_states, params, *, chunk=None):
    """UnidirectionalLSTMEncoder.forward.

    tokens        : (B, S) int32 token ids (padding_idx = 0)
    hidden_states : (h0, c0), each (1, B, H)
    """
    # Fold Embedding + x@Wx + (b_i + b_h) into one gathered table:
    #   x_t @ Wx + b == (Emb @ Wx + b)[token]   (exact up to fp rounding order).
    table = params["embedding"] @ params["wx"] + params["b"]         # (V, 4H) f32
    xp = jnp.take(table, tokens.T, axis=0)                           # (S, B, 4H), time-major
    h0 = hidden_states[0][0]                                         # (B, H)
    c0 = hidden_states[1][0]                                         # (B, H)
    return lstm_pallas(xp, h0, c0, params["wh"], chunk=chunk)


def lstm_reference(x_bse, h0, c0, wx, wh, b):
    """Pure-JAX f32 reference of the PyTorch LSTM.forward loop (for verification)."""
    H = h0.shape[-1]

    def step(carry, x_t):
        h, c = carry
        pre = x_t @ wx + h @ wh + b
        i_t = jax.nn.sigmoid(pre[:, 0:H])
        f_t = jax.nn.sigmoid(pre[:, H:2 * H])
        g_t = jnp.tanh(pre[:, 2 * H:3 * H])
        o_t = jax.nn.sigmoid(pre[:, 3 * H:4 * H])
        c_new = f_t * c + i_t * g_t
        h_new = o_t * jnp.tanh(c_new)
        return (h_new, c_new), h_new

    (hT, cT), outs = jax.lax.scan(step, (h0, c0), jnp.transpose(x_bse, (1, 0, 2)))
    return jnp.transpose(outs, (1, 0, 2)), (hT[None], cT[None])


def init_params(key, vocab, emb_size, hidden):
    keys = jax.random.split(key, 17)
    bound = (1.0 / hidden) ** 0.5
    u = lambda k, shape: jax.random.uniform(k, shape, jnp.float32, -bound, bound)

    # Embedding: padding_idx=0 -> row 0 zeroed (f32; only used for the wrapper table).
    embedding = jax.random.normal(keys[0], (vocab, emb_size), jnp.float32)
    embedding = embedding.at[0].set(0.0)

    # Per-gate weights in (i, f, g, o) order, matching the PyTorch module.
    w_i = [u(keys[1 + k], (hidden, emb_size)) for k in range(4)]     # w_ii, w_if, w_ig, w_io
    b_i = [u(keys[5 + k], (hidden,)) for k in range(4)]
    w_h = [u(keys[9 + k], (hidden, hidden)) for k in range(4)]       # w_hi, w_hf, w_hg, w_ho
    b_h = [u(keys[13 + k], (hidden,)) for k in range(4)]

    # Fused layouts: x @ Wx and h @ Wh produce (B, 4H) with gates (i|f|g|o) in lanes.
    wx = jnp.concatenate([w.T for w in w_i], axis=1)                 # (E, 4H)
    wh = jnp.concatenate([w.T for w in w_h], axis=1)                 # (H, 4H)
    b = jnp.concatenate([bi + bh for bi, bh in zip(b_i, b_h)])[None, :]  # (1, 4H)

    return {
        "embedding": embedding,                  # f32, wrapper-only
        "wx": wx,                                # f32, wrapper-only (folded into table)
        "wh": wh.astype(jnp.bfloat16),           # bf16 recurrent weights for the kernel
        "b": b,                                  # f32, folded into table
    }


if __name__ == "__main__":
    VOCAB, EMB, HIDDEN = 50, 16, 32
    key = jax.random.PRNGKey(0)
    k_par, k_tok, k_h, k_c, k_tok2, k_h2, k_c2 = jax.random.split(key, 7)

    params = init_params(k_par, VOCAB, EMB, HIDDEN)

    def check(tokens, h0, c0, atol):
        out, (hT, cT) = encoder_forward(tokens, (h0, c0), params)
        out, hT, cT = jax.block_until_ready((out, hT, cT))
        B, S = tokens.shape
        assert out.shape == (B, S, HIDDEN)
        assert hT.shape == (1, B, HIDDEN) and cT.shape == (1, B, HIDDEN)
        # f32 reference of the PyTorch loop (same bf16-quantized Wh upcast).
        x = jnp.take(params["embedding"], tokens, axis=0)            # (B, S, E) f32
        ref_out, (rh, rc) = lstm_reference(
            x, h0[0], c0[0], params["wx"],
            params["wh"].astype(jnp.float32), params["b"])
        assert jnp.allclose(out, ref_out, atol=atol)
        assert jnp.allclose(hT, rh, atol=atol)
        assert jnp.allclose(cT, rc, atol=atol)

    # Case 1: module's nominal small shapes (B=2, S=8, H=32): single grid step,
    # fully static unrolled recurrence, no tail masking.
    B, S = 2, 8
    tokens = jax.random.randint(k_tok, (B, S), 0, VOCAB, dtype=jnp.int32)
    h0 = jax.random.normal(k_h, (1, B, HIDDEN), jnp.float32)
    c0 = jax.random.normal(k_c, (1, B, HIDDEN), jnp.float32)
    check(tokens, h0, c0, atol=3e-2)

    # Case 2: longer sequence (S=72, auto chunk=64): exercises the in-kernel
    # pl.loop path, multi-grid-step state carry and padded-tail masking.
    B, S = 2, 72
    tokens2 = jax.random.randint(k_tok2, (B, S), 0, VOCAB, dtype=jnp.int32)
    h02 = jax.random.normal(k_h2, (1, B, HIDDEN), jnp.float32)
    c02 = jax.random.normal(k_c2, (1, B, HIDDEN), jnp.float32)
    check(tokens2, h02, c02, atol=5e-2)

    print("KERNEL_OK")
</pallas_src>

<mosaic_0001>
module attributes {stable_mosaic.version = 11 : i64} {
  func.func @lstm_kernel(%arg0: i32, %arg1: memref<8x2x128xf32, #tpu.memory_space<vmem>>, %arg2: memref<2x32xf32, #tpu.memory_space<vmem>>, %arg3: memref<2x32xf32, #tpu.memory_space<vmem>>, %arg4: memref<32x128xbf16, #tpu.memory_space<vmem>>, %arg5: memref<2x2x128xf32, #tpu.memory_space<vmem>>, %arg6: memref<2x32xf32, #tpu.memory_space<vmem>>, %arg7: memref<2x32xf32, #tpu.memory_space<vmem>>, %arg8: memref<2x32xf32, #tpu.memory_space<vmem>>, %arg9: memref<2x32xf32, #tpu.memory_space<vmem>>) attributes {dimension_semantics = [#tpu.dimension_semantics<arbitrary>], iteration_bounds = array<i64: 1>, scalar_prefetch = 0 : i64, scratch_operands = 2 : i64, tpu.core_type = #tpu.core_type<tc>, window_params = [{transform_indices = @transform_0, window_bounds = array<i64: 8, 2, 128>}, {pipeline_mode = #tpu.pipeline_mode<synchronous>, transform_indices = @transform_1, window_bounds = array<i64: 2, 32>}, {pipeline_mode = #tpu.pipeline_mode<synchronous>, transform_indices = @transform_2, window_bounds = array<i64: 2, 32>}, {pipeline_mode = #tpu.pipeline_mode<synchronous>, transform_indices = @transform_3, window_bounds = array<i64: 32, 128>}, {transform_indices = @transform_4, window_bounds = array<i64: 2, 2, 128>}, {pipeline_mode = #tpu.pipeline_mode<synchronous>, transform_indices = @transform_5, window_bounds = array<i64: 2, 32>}, {pipeline_mode = #tpu.pipeline_mode<synchronous>, transform_indices = @transform_6, window_bounds = array<i64: 2, 32>}]} {
    %c0_i32 = arith.constant 0 : i32
    %0 = arith.cmpi eq, %arg0, %c0_i32 : i32
    %1 = arith.extui %0 : i1 to i32
    %c0_i32_0 = arith.constant 0 : i32
    %2 = arith.cmpi ne, %1, %c0_i32_0 : i32
    scf.if %2 {
      %c0_58 = arith.constant 0 : index
      %c0_59 = arith.constant 0 : index
      %183 = vector.load %arg2[%c0_58, %c0_59] : memref<2x32xf32, #tpu.memory_space<vmem>>, vector<2x32xf32>
      %c0_60 = arith.constant 0 : index
      %c0_61 = arith.constant 0 : index
      %184 = vector.load %arg8[%c0_60, %c0_61] : memref<2x32xf32, #tpu.memory_space<vmem>>, vector<2x32xf32>
      tpu.vector_store %arg8[%c0_60, %c0_61], %183 {strides = array<i32>} : memref<2x32xf32, #tpu.memory_space<vmem>>, vector<2x32xf32>,
      %c0_62 = arith.constant 0 : index
      %c0_63 = arith.constant 0 : index
      %185 = vector.load %arg3[%c0_62, %c0_63] : memref<2x32xf32, #tpu.memory_space<vmem>>, vector<2x32xf32>
      %c0_64 = arith.constant 0 : index
      %c0_65 = arith.constant 0 : index
      %186 = vector.load %arg9[%c0_64, %c0_65] : memref<2x32xf32, #tpu.memory_space<vmem>>, vector<2x32xf32>
      tpu.vector_store %arg9[%c0_64, %c0_65], %185 {strides = array<i32>} : memref<2x32xf32, #tpu.memory_space<vmem>>, vector<2x32xf32>,
    } else {
    }
    %c0 = arith.constant 0 : index
    %c0_1 = arith.constant 0 : index
    %3 = vector.load %arg4[%c0, %c0_1] : memref<32x128xbf16, #tpu.memory_space<vmem>>, vector<32x128xbf16>
    %c0_2 = arith.constant 0 : index
    %c0_3 = arith.constant 0 : index
    %4 = vector.load %arg8[%c0_2, %c0_3] : memref<2x32xf32, #tpu.memory_space<vmem>>, vector<2x32xf32>
    %c0_4 = arith.constant 0 : index
    %c0_5 = arith.constant 0 : index
    %5 = vector.load %arg9[%c0_4, %c0_5] : memref<2x32xf32, #tpu.memory_space<vmem>>, vector<2x32xf32>
    %c0_6 = arith.constant 0 : index
    %c0_7 = arith.constant 0 : index
    %c0_8 = arith.constant 0 : index
    %6 = vector.load %arg1[%c0_6, %c0_7, %c0_8] : memref<8x2x128xf32, #tpu.memory_space<vmem>>, vector<1x2x128xf32>
    %7 = vector.shape_cast %6 : vector<1x2x128xf32> to vector<2x128xf32>
    %8 = arith.truncf %4 : vector<2x32xf32> to vector<2x32xbf16>
    %cst = arith.constant dense<0.000000e+00> : vector<2x128xf32>
    %9 = tpu.matmul %8, %3, %cst {dimension_numbers = #tpu.dot_dimension_numbers<[1], [0], [0], [1], [0, 0, 1, 1], [], []>} : vector<2x32xbf16>, vector<32x128xbf16>, vector<2x128xf32> -> vector<2x128xf32>
    %10 = arith.addf %7, %9 : vector<2x128xf32>
    %11 = arith.negf %10 : vector<2x128xf32>
    %12 = math.exp %11 : vector<2x128xf32>
    %cst_9 = arith.constant 1.000000e+00 : f32
    %13 = vector.broadcast %cst_9 : f32 to vector<2x128xf32>
    %14 = arith.addf %13, %12 : vector<2x128xf32>
    %15 = arith.divf %13, %14 : vector<2x128xf32>
    %16 = math.tanh %10 : vector<2x128xf32>
    %17 = vector.extract_strided_slice %15 {offsets = [0, 0], sizes = [2, 32], strides = [1, 1]} : vector<2x128xf32> to vector<2x32xf32>
    %18 = vector.extract_strided_slice %15 {offsets = [0, 32], sizes = [2, 32], strides = [1, 1]} : vector<2x128xf32> to vector<2x32xf32>
    %19 = vector.extract_strided_slice %16 {offsets = [0, 64], sizes = [2, 32], strides = [1, 1]} : vector<2x128xf32> to vector<2x32xf32>
    %20 = vector.extract_strided_slice %15 {offsets = [0, 96], sizes = [2, 32], strides = [1, 1]} : vector<2x128xf32> to vector<2x32xf32>
    %21 = arith.mulf %18, %5 : vector<2x32xf32>
    %22 = arith.mulf %17, %19 : vector<2x32xf32>
    %23 = arith.addf %21, %22 : vector<2x32xf32>
    %24 = math.tanh %23 : vector<2x32xf32>
    %25 = arith.mulf %20, %24 : vector<2x32xf32>
    %c1 = arith.constant 1 : index
    %c0_10 = arith.constant 0 : index
    %c0_11 = arith.constant 0 : index
    %26 = vector.load %arg1[%c1, %c0_10, %c0_11] : memref<8x2x128xf32, #tpu.memory_space<vmem>>, vector<1x2x128xf32>
    %27 = vector.shape_cast %26 : vector<1x2x128xf32> to vector<2x128xf32>
    %28 = arith.truncf %25 : vector<2x32xf32> to vector<2x32xbf16>
    %cst_12 = arith.constant dense<0.000000e+00> : vector<2x128xf32>
    %29 = tpu.matmul %28, %3, %cst_12 {dimension_numbers = #tpu.dot_dimension_numbers<[1], [0], [0], [1], [0, 0, 1, 1], [], []>} : vector<2x32xbf16>, vector<32x128xbf16>, vector<2x128xf32> -> vector<2x128xf32>
    %30 = arith.addf %27, %29 : vector<2x128xf32>
    %31 = arith.negf %30 : vector<2x128xf32>
    %32 = math.exp %31 : vector<2x128xf32>
    %cst_13 = arith.constant 1.000000e+00 : f32
    %33 = vector.broadcast %cst_13 : f32 to vector<2x128xf32>
    %34 = arith.addf %33, %32 : vector<2x128xf32>
    %35 = arith.divf %33, %34 : vector<2x128xf32>
    %36 = math.tanh %30 : vector<2x128xf32>
    %37 = vector.extract_strided_slice %35 {offsets = [0, 0], sizes = [2, 32], strides = [1, 1]} : vector<2x128xf32> to vector<2x32xf32>
    %38 = vector.extract_strided_slice %35 {offsets = [0, 32], sizes = [2, 32], strides = [1, 1]} : vector<2x128xf32> to vector<2x32xf32>
    %39 = vector.extract_strided_slice %36 {offsets = [0, 64], sizes = [2, 32], strides = [1, 1]} : vector<2x128xf32> to vector<2x32xf32>
    %40 = vector.extract_strided_slice %35 {offsets = [0, 96], sizes = [2, 32], strides = [1, 1]} : vector<2x128xf32> to vector<2x32xf32>
    %41 = arith.mulf %38, %23 : vector<2x32xf32>
    %42 = arith.mulf %37, %39 : vector<2x32xf32>
    %43 = arith.addf %41, %42 : vector<2x32xf32>
    %44 = math.tanh %43 : vector<2x32xf32>
    %45 = arith.mulf %40, %44 : vector<2x32xf32>
    %c2 = arith.constant 2 : index
    %c0_14 = arith.constant 0 : index
    %c0_15 = arith.constant 0 : index
    %46 = vector.load %arg1[%c2, %c0_14, %c0_15] : memref<8x2x128xf32, #tpu.memory_space<vmem>>, vector<1x2x128xf32>
    %47 = vector.shape_cast %46 : vector<1x2x128xf32> to vector<2x128xf32>
    %48 = arith.truncf %45 : vector<2x32xf32> to vector<2x32xbf16>
    %cst_16 = arith.constant dense<0.000000e+00> : vector<2x128xf32>
    %49 = tpu.matmul %48, %3, %cst_16 {dimension_numbers = #tpu.dot_dimension_numbers<[1], [0], [0], [1], [0, 0, 1, 1], [], []>} : vector<2x32xbf16>, vector<32x128xbf16>, vector<2x128xf32> -> vector<2x128xf32>
    %50 = arith.addf %47, %49 : vector<2x128xf32>
    %51 = arith.negf %50 : vector<2x128xf32>
    %52 = math.exp %51 : vector<2x128xf32>
    %cst_17 = arith.constant 1.000000e+00 : f32
    %53 = vector.broadcast %cst_17 : f32 to vector<2x128xf32>
    %54 = arith.addf %53, %52 : vector<2x128xf32>
    %55 = arith.divf %53, %54 : vector<2x128xf32>
    %56 = math.tanh %50 : vector<2x128xf32>
    %57 = vector.extract_strided_slice %55 {offsets = [0, 0], sizes = [2, 32], strides = [1, 1]} : vector<2x128xf32> to vector<2x32xf32>
    %58 = vector.extract_strided_slice %55 {offsets = [0, 32], sizes = [2, 32], strides = [1, 1]} : vector<2x128xf32> to vector<2x32xf32>
    %59 = vector.extract_strided_slice %56 {offsets = [0, 64], sizes = [2, 32], strides = [1, 1]} : vector<2x128xf32> to vector<2x32xf32>
    %60 = vector.extract_strided_slice %55 {offsets = [0, 96], sizes = [2, 32], strides = [1, 1]} : vector<2x128xf32> to vector<2x32xf32>
    %61 = arith.mulf %58, %43 : vector<2x32xf32>
    %62 = arith.mulf %57, %59 : vector<2x32xf32>
    %63 = arith.addf %61, %62 : vector<2x32xf32>
    %64 = math.tanh %63 : vector<2x32xf32>
    %65 = arith.mulf %60, %64 : vector<2x32xf32>
    %c3 = arith.constant 3 : index
    %c0_18 = arith.constant 0 : index
    %c0_19 = arith.constant 0 : index
    %66 = vector.load %arg1[%c3, %c0_18, %c0_19] : memref<8x2x128xf32, #tpu.memory_space<vmem>>, vector<1x2x128xf32>
    %67 = vector.shape_cast %66 : vector<1x2x128xf32> to vector<2x128xf32>
    %68 = arith.truncf %65 : vector<2x32xf32> to vector<2x32xbf16>
    %cst_20 = arith.constant dense<0.000000e+00> : vector<2x128xf32>
    %69 = tpu.matmul %68, %3, %cst_20 {dimension_numbers = #tpu.dot_dimension_numbers<[1], [0], [0], [1], [0, 0, 1, 1], [], []>} : vector<2x32xbf16>, vector<32x128xbf16>, vector<2x128xf32> -> vector<2x128xf32>
    %70 = arith.addf %67, %69 : vector<2x128xf32>
    %71 = arith.negf %70 : vector<2x128xf32>
    %72 = math.exp %71 : vector<2x128xf32>
    %cst_21 = arith.constant 1.000000e+00 : f32
    %73 = vector.broadcast %cst_21 : f32 to vector<2x128xf32>
    %74 = arith.addf %73, %72 : vector<2x128xf32>
    %75 = arith.divf %73, %74 : vector<2x128xf32>
    %76 = math.tanh %70 : vector<2x128xf32>
    %77 = vector.extract_strided_slice %75 {offsets = [0, 0], sizes = [2, 32], strides = [1, 1]} : vector<2x128xf32> to vector<2x32xf32>
    %78 = vector.extract_strided_slice %75 {offsets = [0, 32], sizes = [2, 32], strides = [1, 1]} : vector<2x128xf32> to vector<2x32xf32>
    %79 = vector.extract_strided_slice %76 {offsets = [0, 64], sizes = [2, 32], strides = [1, 1]} : vector<2x128xf32> to vector<2x32xf32>
    %80 = vector.extract_strided_slice %75 {offsets = [0, 96], sizes = [2, 32], strides = [1, 1]} : vector<2x128xf32> to vector<2x32xf32>
    %81 = arith.mulf %78, %63 : vector<2x32xf32>
    %82 = arith.mulf %77, %79 : vector<2x32xf32>
    %83 = arith.addf %81, %82 : vector<2x32xf32>
    %84 = math.tanh %83 : vector<2x32xf32>
    %85 = arith.mulf %80, %84 : vector<2x32xf32>
    %86 = tpu.concatenate %25, %45, %65, %85 in 1 : vector<2x32xf32>, vector<2x32xf32>, vector<2x32xf32>, vector<2x32xf32> -> vector<2x128xf32>
    %c0_22 = arith.constant 0 : index
    %c0_23 = arith.constant 0 : index
    %c0_24 = arith.constant 0 : index
    %87 = vector.load %arg5[%c0_22, %c0_23, %c0_24] : memref<2x2x128xf32, #tpu.memory_space<vmem>>, vector<1x2x128xf32>
    %88 = vector.shape_cast %87 : vector<1x2x128xf32> to vector<2x128xf32>
    %89 = vector.shape_cast %86 : vector<2x128xf32> to vector<1x2x128xf32>
    tpu.vector_store %arg5[%c0_22, %c0_23, %c0_24], %89 {strides = array<i32>} : memref<2x2x128xf32, #tpu.memory_space<vmem>>, vector<1x2x128xf32>,
    %c0_25 = arith.constant 0 : index
    %c0_26 = arith.constant 0 : index
    %90 = vector.load %arg8[%c0_25, %c0_26] : memref<2x32xf32, #tpu.memory_space<vmem>>, vector<2x32xf32>
    tpu.vector_store %arg8[%c0_25, %c0_26], %85 {strides = array<i32>} : memref<2x32xf32, #tpu.memory_space<vmem>>, vector<2x32xf32>,
    %c0_27 = arith.constant 0 : index
    %c0_28 = arith.constant 0 : index
    %91 = vector.load %arg9[%c0_27, %c0_28] : memref<2x32xf32, #tpu.memory_space<vmem>>, vector<2x32xf32>
    tpu.vector_store %arg9[%c0_27, %c0_28], %83 {strides = array<i32>} : memref<2x32xf32, #tpu.memory_space<vmem>>, vector<2x32xf32>,
    %c0_29 = arith.constant 0 : index
    %c0_30 = arith.constant 0 : index
    %92 = vector.load %arg8[%c0_29, %c0_30] : memref<2x32xf32, #tpu.memory_space<vmem>>, vector<2x32xf32>
    %c0_31 = arith.constant 0 : index
    %c0_32 = arith.constant 0 : index
    %93 = vector.load %arg9[%c0_31, %c0_32] : memref<2x32xf32, #tpu.memory_space<vmem>>, vector<2x32xf32>
    %c4 = arith.constant 4 : index
    %c0_33 = arith.constant 0 : index
    %c0_34 = arith.constant 0 : index
    %94 = vector.load %arg1[%c4, %c0_33, %c0_34] : memref<8x2x128xf32, #tpu.memory_space<vmem>>, vector<1x2x128xf32>
    %95 = vector.shape_cast %94 : vector<1x2x128xf32> to vector<2x128xf32>
    %96 = arith.truncf %92 : vector<2x32xf32> to vector<2x32xbf16>
    %cst_35 = arith.constant dense<0.000000e+00> : vector<2x128xf32>
    %97 = tpu.matmul %96, %3, %cst_35 {dimension_numbers = #tpu.dot_dimension_numbers<[1], [0], [0], [1], [0, 0, 1, 1], [], []>} : vector<2x32xbf16>, vector<32x128xbf16>, vector<2x128xf32> -> vector<2x128xf32>
    %98 = arith.addf %95, %97 : vector<2x128xf32>
    %99 = arith.negf %98 : vector<2x128xf32>
    %100 = math.exp %99 : vector<2x128xf32>
    %cst_36 = arith.constant 1.000000e+00 : f32
    %101 = vector.broadcast %cst_36 : f32 to vector<2x128xf32>
    %102 = arith.addf %101, %100 : vector<2x128xf32>
    %103 = arith.divf %101, %102 : vector<2x128xf32>
    %104 = math.tanh %98 : vector<2x128xf32>
    %105 = vector.extract_strided_slice %103 {offsets = [0, 0], sizes = [2, 32], strides = [1, 1]} : vector<2x128xf32> to vector<2x32xf32>
    %106 = vector.extract_strided_slice %103 {offsets = [0, 32], sizes = [2, 32], strides = [1, 1]} : vector<2x128xf32> to vector<2x32xf32>
    %107 = vector.extract_strided_slice %104 {offsets = [0, 64], sizes = [2, 32], strides = [1, 1]} : vector<2x128xf32> to vector<2x32xf32>
    %108 = vector.extract_strided_slice %103 {offsets = [0, 96], sizes = [2, 32], strides = [1, 1]} : vector<2x128xf32> to vector<2x32xf32>
    %109 = arith.mulf %106, %93 : vector<2x32xf32>
    %110 = arith.mulf %105, %107 : vector<2x32xf32>
    %111 = arith.addf %109, %110 : vector<2x32xf32>
    %112 = math.tanh %111 : vector<2x32xf32>
    %113 = arith.mulf %108, %112 : vector<2x32xf32>
    %c5 = arith.constant 5 : index
    %c0_37 = arith.constant 0 : index
    %c0_38 = arith.constant 0 : index
    %114 = vector.load %arg1[%c5, %c0_37, %c0_38] : memref<8x2x128xf32, #tpu.memory_space<vmem>>, vector<1x2x128xf32>
    %115 = vector.shape_cast %114 : vector<1x2x128xf32> to vector<2x128xf32>
    %116 = arith.truncf %113 : vector<2x32xf32> to vector<2x32xbf16>
    %cst_39 = arith.constant dense<0.000000e+00> : vector<2x128xf32>
    %117 = tpu.matmul %116, %3, %cst_39 {dimension_numbers = #tpu.dot_dimension_numbers<[1], [0], [0], [1], [0, 0, 1, 1], [], []>} : vector<2x32xbf16>, vector<32x128xbf16>, vector<2x128xf32> -> vector<2x128xf32>
    %118 = arith.addf %115, %117 : vector<2x128xf32>
    %119 = arith.negf %118 : vector<2x128xf32>
    %120 = math.exp %119 : vector<2x128xf32>
    %cst_40 = arith.constant 1.000000e+00 : f32
    %121 = vector.broadcast %cst_40 : f32 to vector<2x128xf32>
    %122 = arith.addf %121, %120 : vector<2x128xf32>
    %123 = arith.divf %121, %122 : vector<2x128xf32>
    %124 = math.tanh %118 : vector<2x128xf32>
    %125 = vector.extract_strided_slice %123 {offsets = [0, 0], sizes = [2, 32], strides = [1, 1]} : vector<2x128xf32> to vector<2x32xf32>
    %126 = vector.extract_strided_slice %123 {offsets = [0, 32], sizes = [2, 32], strides = [1, 1]} : vector<2x128xf32> to vector<2x32xf32>
    %127 = vector.extract_strided_slice %124 {offsets = [0, 64], sizes = [2, 32], strides = [1, 1]} : vector<2x128xf32> to vector<2x32xf32>
    %128 = vector.extract_strided_slice %123 {offsets = [0, 96], sizes = [2, 32], strides = [1, 1]} : vector<2x128xf32> to vector<2x32xf32>
    %129 = arith.mulf %126, %111 : vector<2x32xf32>
    %130 = arith.mulf %125, %127 : vector<2x32xf32>
    %131 = arith.addf %129, %130 : vector<2x32xf32>
    %132 = math.tanh %131 : vector<2x32xf32>
    %133 = arith.mulf %128, %132 : vector<2x32xf32>
    %c6 = arith.constant 6 : index
    %c0_41 = arith.constant 0 : index
    %c0_42 = arith.constant 0 : index
    %134 = vector.load %arg1[%c6, %c0_41, %c0_42] : memref<8x2x128xf32, #tpu.memory_space<vmem>>, vector<1x2x128xf32>
    %135 = vector.shape_cast %134 : vector<1x2x128xf32> to vector<2x128xf32>
    %136 = arith.truncf %133 : vector<2x32xf32> to vector<2x32xbf16>
    %cst_43 = arith.constant dense<0.000000e+00> : vector<2x128xf32>
    %137 = tpu.matmul %136, %3, %cst_43 {dimension_numbers = #tpu.dot_dimension_numbers<[1], [0], [0], [1], [0, 0, 1, 1], [], []>} : vector<2x32xbf16>, vector<32x128xbf16>, vector<2x128xf32> -> vector<2x128xf32>
    %138 = arith.addf %135, %137 : vector<2x128xf32>
    %139 = arith.negf %138 : vector<2x128xf32>
    %140 = math.exp %139 : vector<2x128xf32>
    %cst_44 = arith.constant 1.000000e+00 : f32
    %141 = vector.broadcast %cst_44 : f32 to vector<2x128xf32>
    %142 = arith.addf %141, %140 : vector<2x128xf32>
    %143 = arith.divf %141, %142 : vector<2x128xf32>
    %144 = math.tanh %138 : vector<2x128xf32>
    %145 = vector.extract_strided_slice %143 {offsets = [0, 0], sizes = [2, 32], strides = [1, 1]} : vector<2x128xf32> to vector<2x32xf32>
    %146 = vector.extract_strided_slice %143 {offsets = [0, 32], sizes = [2, 32], strides = [1, 1]} : vector<2x128xf32> to vector<2x32xf32>
    %147 = vector.extract_strided_slice %144 {offsets = [0, 64], sizes = [2, 32], strides = [1, 1]} : vector<2x128xf32> to vector<2x32xf32>
    %148 = vector.extract_strided_slice %143 {offsets = [0, 96], sizes = [2, 32], strides = [1, 1]} : vector<2x128xf32> to vector<2x32xf32>
    %149 = arith.mulf %146, %131 : vector<2x32xf32>
    %150 = arith.mulf %145, %147 : vector<2x32xf32>
    %151 = arith.addf %149, %150 : vector<2x32xf32>
    %152 = math.tanh %151 : vector<2x32xf32>
    %153 = arith.mulf %148, %152 : vector<2x32xf32>
    %c7 = arith.constant 7 : index
    %c0_45 = arith.constant 0 : index
    %c0_46 = arith.constant 0 : index
    %154 = vector.load %arg1[%c7, %c0_45, %c0_46] : memref<8x2x128xf32, #tpu.memory_space<vmem>>, vector<1x2x128xf32>
    %155 = vector.shape_cast %154 : vector<1x2x128xf32> to vector<2x128xf32>
    %156 = arith.truncf %153 : vector<2x32xf32> to vector<2x32xbf16>
    %cst_47 = arith.constant dense<0.000000e+00> : vector<2x128xf32>
    %157 = tpu.matmul %156, %3, %cst_47 {dimension_numbers = #tpu.dot_dimension_numbers<[1], [0], [0], [1], [0, 0, 1, 1], [], []>} : vector<2x32xbf16>, vector<32x128xbf16>, vector<2x128xf32> -> vector<2x128xf32>
    %158 = arith.addf %155, %157 : vector<2x128xf32>
    %159 = arith.negf %158 : vector<2x128xf32>
    %160 = math.exp %159 : vector<2x128xf32>
    %cst_48 = arith.constant 1.000000e+00 : f32
    %161 = vector.broadcast %cst_48 : f32 to vector<2x128xf32>
    %162 = arith.addf %161, %160 : vector<2x128xf32>
    %163 = arith.divf %161, %162 : vector<2x128xf32>
    %164 = math.tanh %158 : vector<2x128xf32>
    %165 = vector.extract_strided_slice %163 {offsets = [0, 0], sizes = [2, 32], strides = [1, 1]} : vector<2x128xf32> to vector<2x32xf32>
    %166 = vector.extract_strided_slice %163 {offsets = [0, 32], sizes = [2, 32], strides = [1, 1]} : vector<2x128xf32> to vector<2x32xf32>
    %167 = vector.extract_strided_slice %164 {offsets = [0, 64], sizes = [2, 32], strides = [1, 1]} : vector<2x128xf32> to vector<2x32xf32>
    %168 = vector.extract_strided_slice %163 {offsets = [0, 96], sizes = [2, 32], strides = [1, 1]} : vector<2x128xf32> to vector<2x32xf32>
    %169 = arith.mulf %166, %151 : vector<2x32xf32>
    %170 = arith.mulf %165, %167 : vector<2x32xf32>
    %171 = arith.addf %169, %170 : vector<2x32xf32>
    %172 = math.tanh %171 : vector<2x32xf32>
    %173 = arith.mulf %168, %172 : vector<2x32xf32>
    %174 = tpu.concatenate %113, %133, %153, %173 in 1 : vector<2x32xf32>, vector<2x32xf32>, vector<2x32xf32>, vector<2x32xf32> -> vector<2x128xf32>
    %c1_49 = arith.constant 1 : index
    %c0_50 = arith.constant 0 : index
    %c0_51 = arith.constant 0 : index
    %175 = vector.load %arg5[%c1_49, %c0_50, %c0_51] : memref<2x2x128xf32, #tpu.memory_space<vmem>>, vector<1x2x128xf32>
    %176 = vector.shape_cast %175 : vector<1x2x128xf32> to vector<2x128xf32>
    %177 = vector.shape_cast %174 : vector<2x128xf32> to vector<1x2x128xf32>
    tpu.vector_store %arg5[%c1_49, %c0_50, %c0_51], %177 {strides = array<i32>} : memref<2x2x128xf32, #tpu.memory_space<vmem>>, vector<1x2x128xf32>,
    %c0_52 = arith.constant 0 : index
    %c0_53 = arith.constant 0 : index
    %178 = vector.load %arg8[%c0_52, %c0_53] : memref<2x32xf32, #tpu.memory_space<vmem>>, vector<2x32xf32>
    tpu.vector_store %arg8[%c0_52, %c0_53], %173 {strides = array<i32>} : memref<2x32xf32, #tpu.memory_space<vmem>>, vector<2x32xf32>,
    %c0_54 = arith.constant 0 : index
    %c0_55 = arith.constant 0 : index
    %179 = vector.load %arg9[%c0_54, %c0_55] : memref<2x32xf32, #tpu.memory_space<vmem>>, vector<2x32xf32>
    tpu.vector_store %arg9[%c0_54, %c0_55], %171 {strides = array<i32>} : memref<2x32xf32, #tpu.memory_space<vmem>>, vector<2x32xf32>,
    %c0_i32_56 = arith.constant 0 : i32
    %180 = arith.cmpi eq, %arg0, %c0_i32_56 : i32
    %181 = arith.extui %180 : i1 to i32
    %c0_i32_57 = arith.constant 0 : i32
    %182 = arith.cmpi ne, %181, %c0_i32_57 : i32
    scf.if %182 {
      %c0_58 = arith.constant 0 : index
      %c0_59 = arith.constant 0 : index
      %183 = vector.load %arg8[%c0_58, %c0_59] : memref<2x32xf32, #tpu.memory_space<vmem>>, vector<2x32xf32>
      %c0_60 = arith.constant 0 : index
      %c0_61 = arith.constant 0 : index
      %184 = vector.load %arg6[%c0_60, %c0_61] : memref<2x32xf32, #tpu.memory_space<vmem>>, vector<2x32xf32>
      tpu.vector_store %arg6[%c0_60, %c0_61], %183 {strides = array<i32>} : memref<2x32xf32, #tpu.memory_space<vmem>>, vector<2x32xf32>,
      %c0_62 = arith.constant 0 : index
      %c0_63 = arith.constant 0 : index
      %185 = vector.load %arg9[%c0_62, %c0_63] : memref<2x32xf32, #tpu.memory_space<vmem>>, vector<2x32xf32>
      %c0_64 = arith.constant 0 : index
      %c0_65 = arith.constant 0 : index
      %186 = vector.load %arg7[%c0_64, %c0_65] : memref<2x32xf32, #tpu.memory_space<vmem>>, vector<2x32xf32>
      tpu.vector_store %arg7[%c0_64, %c0_65], %185 {strides = array<i32>} : memref<2x32xf32, #tpu.memory_space<vmem>>, vector<2x32xf32>,
    } else {
    }
    return
  }
  func.func @transform_0(%arg0: i32) -> (i32, i32, i32) {
    %c0_i32 = arith.constant 0 : i32
    %c0_i32_0 = arith.constant 0 : i32
    %c0_i32_1 = arith.constant 0 : i32
    return %arg0, %c0_i32, %c0_i32_0 : i32, i32, i32
  }
  func.func @transform_1(%arg0: i32) -> (i32, i32) {
    %c0_i32 = arith.constant 0 : i32
    %c0_i32_0 = arith.constant 0 : i32
    %c0_i32_1 = arith.constant 0 : i32
    return %c0_i32, %c0_i32_0 : i32, i32
  }
  func.func @transform_2(%arg0: i32) -> (i32, i32) {
    %c0_i32 = arith.constant 0 : i32
    %c0_i32_0 = arith.constant 0 : i32
    %c0_i32_1 = arith.constant 0 : i32
    return %c0_i32, %c0_i32_0 : i32, i32
  }
  func.func @transform_3(%arg0: i32) -> (i32, i32) {
    %c0_i32 = arith.constant 0 : i32
    %c0_i32_0 = arith.constant 0 : i32
    %c0_i32_1 = arith.constant 0 : i32
    return %c0_i32, %c0_i32_0 : i32, i32
  }
  func.func @transform_4(%arg0: i32) -> (i32, i32, i32) {
    %c0_i32 = arith.constant 0 : i32
    %c0_i32_0 = arith.constant 0 : i32
    %c0_i32_1 = arith.constant 0 : i32
    return %arg0, %c0_i32, %c0_i32_0 : i32, i32, i32
  }
  func.func @transform_5(%arg0: i32) -> (i32, i32) {
    %c0_i32 = arith.constant 0 : i32
    %c0_i32_0 = arith.constant 0 : i32
    %c0_i32_1 = arith.constant 0 : i32
    return %c0_i32, %c0_i32_0 : i32, i32
  }
  func.func @transform_6(%arg0: i32) -> (i32, i32) {
    %c0_i32 = arith.constant 0 : i32
    %c0_i32_0 = arith.constant 0 : i32
    %c0_i32_1 = arith.constant 0 : i32
    return %c0_i32, %c0_i32_0 : i32, i32
  }
}

</mosaic_0001>

<bundles_post_ra>
// kernel: tpu_custom_call.1
= control target key start
LH: loop header
LB: loop body
LE: loop exit
PB: predicated region body
PF: predicated region fallthrough
CT: control target
= control target key end

     0   :  { %12 = vsyncpa [#allocation5], 0  ;;  %s1359_s0 = inlined_call_operand.hbm [shape: f32[8,2,128], index: 0, kind: input, shape index: {}]   ;;  %s1360_s1 = inlined_call_operand.vmem [shape: f32[2,32], index: 1, kind: input, shape index: {}]   ;;  %s1361_s2 = inlined_call_operand.vmem [shape: f32[2,32], index: 2, kind: input, shape index: {}]   ;;  %s1362_s3 = inlined_call_operand.hbm [shape: bf16[32,128], index: 3, kind: input, shape index: {}]   ;;  %s1363_s4 = inlined_call_operand.hbm [shape: f32[2,2,128], index: 4, kind: output, shape index: {0}]   ;;  %s1364_s5 = inlined_call_operand.hbm [shape: f32[2,32], index: 5, kind: output, shape index: {1}]   ;;  %s1365_s6 = inlined_call_operand.hbm [shape: f32[2,32], index: 6, kind: output, shape index: {2}]  }
   0x1   :  { %13 = vsyncpa [#allocation8], 0 }
   0x2   :  { %14 = vsyncpa [#allocation6], 0 }
   0x3   :  { %15 = vsyncpa [#allocation11], 0  ;;  %s1084_s21 = smov [#allocation4]   ;;  %s966_s25 = scalar_lea.hbm %s1359_s0, 256 }
   0x4   :  { %s21_s22 = sshll.u32 %s1084_s21, 4  ;;  %p967_p0 = scmp.ne.s32.totalorder %s1359_s0, %s966_s25  ;;  %s22_s22 = int_to_ptr.vmem [resolvable:$true] %s21_s22 }
   0x5   :  { %p970_p1 = scmp.lt.u32.totalorder %s966_s25, %s1359_s0 }
   0x7   :  { %p972_p2 = pnand %p970_p1, %p967_p0 }
   0x9   :  { %975 = shalt.err (!%p972_p2)
}
   0xa   :  { %s976_s30 = scalar_lea.vmem %s22_s22, 256  ;;  %p981_p4 = scmp.lt.s32.totalorder %s22_s22, %s22_s22 }
   0xb   :  { %p977_p3 = scmp.ne.s32.totalorder %s22_s22, %s976_s30  ;;  %p982_p5 = scmp.lt.s32.totalorder %s976_s30, %s976_s30 }
   0xd   :  { %p983_p6 = por %p982_p5, %p981_p4 }
   0xf   :  { %p984_p7 = pnand %p983_p6, %p977_p3 }
  0x11   :  { %987 = shalt.err (!%p984_p7)
}
  0x12   :  { %s1085_s7 = smov 32   ;;  %s1086_s8 = smov 2  }
  0x13   :  { %27 = dma.hbm_to_vmem [thread:$0]  %s1359_s0, 256, %s22_s22, [#allocation5], %s1085_s7, %s1085_s7, %s1086_s8  }
  0x14   :  { %s1087_s11 = smov [#allocation7]   ;;  %s988_s15 = scalar_lea.hbm %s1362_s3, 256 }
  0x15   :  { %s37_s12 = sshll.u32 %s1087_s11, 4  ;;  %p989_p8 = scmp.ne.s32.totalorder %s1362_s3, %s988_s15  ;;  %s38_s12 = int_to_ptr.vmem [resolvable:$true] %s37_s12 }
  0x16   :  { %p992_p9 = scmp.lt.u32.totalorder %s988_s15, %s1362_s3 }
  0x18   :  { %p994_p10 = pnand %p992_p9, %p989_p8 }
  0x1a   :  { %997 = shalt.err (!%p994_p10)
}
  0x1b   :  { %s998_s20 = scalar_lea.vmem %s38_s12, 256  ;;  %p1003_p12 = scmp.lt.s32.totalorder %s38_s12, %s38_s12 }
  0x1c   :  { %p999_p11 = scmp.ne.s32.totalorder %s38_s12, %s998_s20  ;;  %p1004_p13 = scmp.lt.s32.totalorder %s998_s20, %s998_s20 }
  0x1e   :  { %p1005_p0 = por %p1004_p13, %p1003_p12 }
  0x20   :  { %p1006_p1 = pnand %p1005_p0, %p999_p11 }
  0x22   :  { %1009 = shalt.err (!%p1006_p1)
}
  0x23   :  { %s1088_s0 = smov 64   ;;  %s1089_s21 = smov 4  }
  0x24   :  { %43 = dma.hbm_to_vmem [thread:$0]  %s1362_s3, 256, %s38_s12, [#allocation8], %s1088_s0, %s1088_s0, %s1089_s21  }
  0x25   :  { %1076 = dma.done.wait [#allocation5], 256  }
  0x26   :  { %1077 = vsyncadd [#allocation5], 4294967040 }
  0x27   :  { %1078 = dma.done.wait [#allocation8], 256  }
  0x28   :  { %1079 = vsyncadd [#allocation8], 4294967040  ;;  %v1090_v0 = vmov 0.0   ;;  %vm1091_vm0 = vmmov 0   ;;  %v1166_v1 = vld [vmem:[#allocation7] sm:$0xff]   ;;  %vm56_vm1 = vcmask 254976  }
  0x29   :  { %824 = vmatprep.subr.bf16.mxu0 %v1090_v0  ;;  %828 = vmatprep.mubr.msk.bf16.mxu0 %vm1091_vm0, %v1090_v0  ;;  %v1169_v2 = vld [vmem:[#allocation7 + $0x8] sm:$0xff]   ;;  %vm80_vm2 = vcmask 261120   ;;  %v66_v7 = vld [vmem:[#allocation4] sm:$0x3]  ;;  %v154_v30 = vld [vmem:[#allocation4 + $0x2] sm:$0x3] }
  0x2a   :  { %832 = vmatprep.subr.bf16.mxu1 %v1090_v0  ;;  %836 = vmatprep.mubr.msk.bf16.mxu1 %vm1091_vm0, %v1090_v0  ;;  %v55_v3 = vld [vmem:[%s1360_s1] sm:$0x3]  ;;  %v228_v51 = vld [vmem:[#allocation4 + $0x4] sm:$0x3]  ;;  %vm388_vm3 = vcmask 523264   ;;  %vm390_vm4 = vcmask 785408  }
  0x2b   :  { %825 = vmatpush3.bf16.msra.mxu0 %v1166_v1  ;;  %833 = vmatpush3.bf16.msra.mxu1 %v1166_v1  ;;  %57 = vst.msk [vmem:[#allocation2] sm:$0x3] %vm56_vm1, %v55_v3  ;;  %v58_v6 = vld [vmem:[%s1361_s2] sm:$0x3]  ;;  %s1092_s2 = smov 96   ;;  %s1093_s26 = smov [#allocation10]  }
  0x2c   :  { %826 = vmatprep.subr.bf16.mxu0 %v1090_v0  ;;  %834 = vmatprep.subr.bf16.mxu1 %v1090_v0  ;;  %59 = vst.msk [vmem:[#allocation3] sm:$0x3] %vm56_vm1, %v58_v6  ;;  %s755_s27 = sshll.u32 %s1093_s26, 4  ;;  %s1094_s28 = smov [#allocation12]   ;;  %s756_s27 = int_to_ptr.vmem [resolvable:$true] %s755_s27 }
  0x2d   :  { %s765_s29 = sshll.u32 %s1094_s28, 4  ;;  %s1095_s30 = smov [#allocation9]   ;;  %s1302_s29 = int_to_ptr.vmem [resolvable:$true] %s765_s29 }
  0x2e   :  { %s742_s9 = sshll.u32 %s1095_s30, 4  ;;  %s1010_s10 = scalar_lea.vmem %s756_s27, 32  ;;  %s1306_s9 = int_to_ptr.vmem [resolvable:$true] %s742_s9 }
  0x2f   :  { %827 = vmatpush3.bf16.msra.mxu0 %v1169_v2  ;;  %835 = vmatpush3.bf16.msra.mxu1 %v1169_v2  ;;  %p1011_p2 = scmp.ne.s32.totalorder %s756_s27, %s1010_s10  ;;  %p1015_p3 = scmp.lt.s32.totalorder %s756_s27, %s756_s27 }
  0x30   :  { %840 = vmatprep.subr.bf16.mxu0 %v1090_v0  ;;  %848 = vmatprep.subr.bf16.mxu1 %v1090_v0  ;;  %p1016_p4 = scmp.lt.s32.totalorder %s1010_s10, %s1010_s10 }
  0x32   :  { %v64_v4 = vld [vmem:[#allocation2] sm:$0x3]  ;;  %p1017_p5 = por %p1016_p4, %p1015_p3 }
  0x33   :  { %v67_v5 = vpack.c.bf16 %v64_v4, %v64_v4  ;;  %v65_v14 = vld [vmem:[#allocation3] sm:$0x3] }
  0x34   :  { %p1018_p6 = pnand %p1017_p5, %p1011_p2 }
  0x35   :  { %829 = vmatmul.mubr.msk.bf16.vlgmr.msra.gmra.mrb[0].mxu0 %vm80_vm2, %v67_v5 }
  0x36   :  { %841 = vmatpush3.bf16.msra.mxu0 %v1166_v1  ;;  %844 = vmatprep.mubr.msk.bf16.mxu0 %vm1091_vm0, %v1090_v0 }
  0x37   :  { %842 = vmatprep.subr.bf16.mxu0 %v1090_v0 }
  0x3a   :  { %843 = vmatpush3.bf16.msra.mxu0 %v1169_v2 }
  0x3b   :  { %856 = vmatprep.subr.bf16.mxu0 %v1090_v0 }
 0x108   :  { %v118_v8 = vpop.f32.mrb[0].mxu0 }
 0x109   :  { %v124_v9 = vadd.f32 %v118_v8, %v66_v7  ;;  %v830_v10 = vpop.f32.mrb[1].mxu0 }
 0x10a   :  { %v121_v11 = vpop.f32.mrb[2].mxu0 }
 0x10b   :  { %v831_v12 = vpop.f32.mrb[3].mxu0  ;;  %902 = vtanh.f32 %v124_v9  ;;  %v785_v15 = vmul.f32 -1.442695, %v124_v9  ;;  %v302_v11 = vld [vmem:[#allocation4 + $0x6] sm:$0x3] }
 0x10d   :  { %904 = vpow2.f32 %v785_v15 }
 0x115   :  { %v903_v13 = vpop.eup %902 }
 0x116   :  { %138 = vrot.lane.b32.xlu0 %v903_v13, %s1088_s0 }
 0x117   :  { %v905_v16 = vpop.eup %904 }
 0x118   :  { %v128_v17 = vadd.f32 1.0, %v905_v16 }
 0x11a   :  { %133 = vrot.lane.b32.xlu0 %v65_v14, %s1085_s7  ;;  %906 = vrcp.f32 %v128_v17 }
 0x124   :  { %v907_v18 = vpop.eup %906 }
 0x188   :  { %v139_v19 = vpop.permute.xlu0 %138 }
 0x189   :  { %v141_v20 = vmul.f32 %v907_v18, %v139_v19 }
 0x18b   :  { %143 = vrot.lane.b32.xlu1 %v141_v20, %s1085_s7 }
 0x18c   :  { %v134_v21 = vpop.permute.xlu0 %133 }
 0x18d   :  { %v136_v22 = vmul.f32 %v907_v18, %v134_v21 }
 0x1fd   :  { %v144_v23 = vpop.permute.xlu1 %143 }
 0x1fe   :  { %v146_v24 = vadd.f32 %v144_v23, %v136_v22 }
 0x200   :  { %908 = vtanh.f32 %v146_v24 }
 0x20a   :  { %v909_v25 = vpop.eup %908 }
 0x20b   :  { %149 = vrot.lane.b32.xlu1 %v909_v25, %s1088_s0 }
 0x27d   :  { %v150_v26 = vpop.permute.xlu1 %149 }
 0x27e   :  { %v1197_v27 = vmul.f32 %v907_v18, %v150_v26 }
 0x280   :  { %v155_v28 = vpack.c.bf16 %v1197_v27, %v1197_v27 }
 0x282   :  { %157 = vrot.lane.b32.xlu0 %v155_v28, %s1085_s7 }
 0x2f4   :  { %v158_v29 = vpop.permute.xlu0 %157 }
 0x2f5   :  { %837 = vmatmul.mubr.msk.bf16.vlgmr.msra.gmra.mrb[0].mxu1 %vm80_vm2, %v158_v29 }
 0x2f6   :  { %849 = vmatpush3.bf16.msra.mxu1 %v1166_v1  ;;  %852 = vmatprep.mubr.msk.bf16.mxu1 %vm1091_vm0, %v1090_v0 }
 0x2f7   :  { %850 = vmatprep.subr.bf16.mxu1 %v1090_v0 }
 0x2fa   :  { %851 = vmatpush3.bf16.msra.mxu1 %v1169_v2 }
 0x2fb   :  { %864 = vmatprep.subr.bf16.mxu1 %v1090_v0 }
 0x3c8   :  { %v196_v31 = vpop.f32.mrb[0].mxu1 }
 0x3c9   :  { %v202_v32 = vadd.f32 %v196_v31, %v154_v30  ;;  %v838_v33 = vpop.f32.mrb[1].mxu1 }
 0x3ca   :  { %v199_v34 = vpop.f32.mrb[2].mxu1 }
 0x3cb   :  { %910 = vtanh.f32 %v202_v32  ;;  %v839_v35 = vpop.f32.mrb[3].mxu1  ;;  %v787_v37 = vmul.f32 -1.442695, %v202_v32 }
 0x3cd   :  { %912 = vpow2.f32 %v787_v37 }
 0x3d5   :  { %v911_v36 = vpop.eup %910 }
 0x3d6   :  { %212 = vrot.lane.b32.xlu1 %v911_v36, %s1088_s0  ;;  %v407_v36 = vld [vmem:[#allocation4 + $0x8] sm:$0x3] }
 0x3d7   :  { %v913_v38 = vpop.eup %912 }
 0x3d8   :  { %v206_v39 = vadd.f32 1.0, %v913_v38 }
 0x3da   :  { %914 = vrcp.f32 %v206_v39 }
 0x3e4   :  { %v915_v40 = vpop.eup %914 }
 0x3e5   :  { %v210_v43 = vmul.f32 %v915_v40, %v146_v24 }
 0x448   :  { %v213_v41 = vpop.permute.xlu1 %212 }
 0x449   :  { %v215_v42 = vmul.f32 %v915_v40, %v213_v41 }
 0x44b   :  { %217 = vrot.lane.b32.xlu0 %v215_v42, %s1085_s7 }
 0x4bd   :  { %v218_v44 = vpop.permute.xlu0 %217 }
 0x4be   :  { %v220_v45 = vadd.f32 %v218_v44, %v210_v43 }
 0x4c0   :  { %916 = vtanh.f32 %v220_v45 }
 0x4ca   :  { %v917_v46 = vpop.eup %916 }
 0x4cb   :  { %223 = vrot.lane.b32.xlu1 %v917_v46, %s1088_s0 }
 0x53d   :  { %v224_v47 = vpop.permute.xlu1 %223 }
 0x53e   :  { %v1212_v48 = vmul.f32 %v915_v40, %v224_v47 }
 0x540   :  { %v229_v49 = vpack.c.bf16 %v1212_v48, %v1212_v48 }
 0x542   :  { %231 = vrot.lane.b32.xlu0 %v229_v49, %s1085_s7 }
 0x5b4   :  { %v232_v50 = vpop.permute.xlu0 %231 }
 0x5b5   :  { %845 = vmatmul.mubr.msk.bf16.vlgmr.msra.gmra.mrb[4].mxu0 %vm80_vm2, %v232_v50 }
 0x5b6   :  { %857 = vmatpush3.bf16.msra.mxu0 %v1166_v1  ;;  %860 = vmatprep.mubr.msk.bf16.mxu0 %vm1091_vm0, %v1090_v0 }
 0x5b7   :  { %858 = vmatprep.subr.bf16.mxu0 %v1090_v0 }
 0x5ba   :  { %859 = vmatpush3.bf16.msra.mxu0 %v1169_v2 }
 0x5bb   :  { %872 = vmatprep.subr.bf16.mxu0 %v1090_v0 }
 0x688   :  { %v270_v52 = vpop.f32.mrb[4].mxu0 }
 0x689   :  { %v276_v53 = vadd.f32 %v270_v52, %v228_v51  ;;  %v846_v54 = vpop.f32.mrb[5].mxu0 }
 0x68a   :  { %v273_v55 = vpop.f32.mrb[6].mxu0 }
 0x68b   :  { %918 = vtanh.f32 %v276_v53  ;;  %v847_v56 = vpop.f32.mrb[7].mxu0  ;;  %v789_v58 = vmul.f32 -1.442695, %v276_v53 }
 0x68d   :  { %920 = vpow2.f32 %v789_v58 }
 0x695   :  { %v919_v57 = vpop.eup %918 }
 0x696   :  { %286 = vrot.lane.b32.xlu1 %v919_v57, %s1088_s0 }
 0x697   :  { %v921_v59 = vpop.eup %920 }
 0x698   :  { %v280_v60 = vadd.f32 1.0, %v921_v59  ;;  %v482_v59 = vld [vmem:[#allocation4 + $0xa] sm:$0x3] }
 0x69a   :  { %922 = vrcp.f32 %v280_v60 }
 0x6a4   :  { %v923_v61 = vpop.eup %922 }
 0x6a5   :  { %v284_v3 = vmul.f32 %v923_v61, %v220_v45 }
 0x708   :  { %v287_v62 = vpop.permute.xlu1 %286 }
 0x709   :  { %v289_v63 = vmul.f32 %v923_v61, %v287_v62 }
 0x70b   :  { %291 = vrot.lane.b32.xlu0 %v289_v63, %s1085_s7 }
 0x77d   :  { %v292_v4 = vpop.permute.xlu0 %291 }
 0x77e   :  { %v294_v5 = vadd.f32 %v292_v4, %v284_v3 }
 0x780   :  { %924 = vtanh.f32 %v294_v5 }
 0x78a   :  { %v925_v6 = vpop.eup %924 }
 0x78b   :  { %297 = vrot.lane.b32.xlu1 %v925_v6, %s1088_s0 }
 0x7fd   :  { %v298_v7 = vpop.permute.xlu1 %297 }
 0x7fe   :  { %v1227_v8 = vmul.f32 %v923_v61, %v298_v7 }
 0x800   :  { %v303_v9 = vpack.c.bf16 %v1227_v8, %v1227_v8 }
 0x802   :  { %305 = vrot.lane.b32.xlu0 %v303_v9, %s1085_s7 }
 0x874   :  { %v306_v10 = vpop.permute.xlu0 %305 }
 0x875   :  { %853 = vmatmul.mubr.msk.bf16.vlgmr.msra.gmra.mrb[4].mxu1 %vm80_vm2, %v306_v10 }
 0x876   :  { %865 = vmatpush3.bf16.msra.mxu1 %v1166_v1  ;;  %868 = vmatprep.mubr.msk.bf16.mxu1 %vm1091_vm0, %v1090_v0 }
 0x877   :  { %866 = vmatprep.subr.bf16.mxu1 %v1090_v0 }
 0x87a   :  { %867 = vmatpush3.bf16.msra.mxu1 %v1169_v2 }
 0x87b   :  { %880 = vmatprep.subr.bf16.mxu1 %v1090_v0 }
 0x948   :  { %v344_v12 = vpop.f32.mrb[4].mxu1 }
 0x949   :  { %v350_v13 = vadd.f32 %v344_v12, %v302_v11  ;;  %v854_v14 = vpop.f32.mrb[5].mxu1 }
 0x94a   :  { %v347_v15 = vpop.f32.mrb[6].mxu1 }
 0x94b   :  { %926 = vtanh.f32 %v350_v13  ;;  %v855_v16 = vpop.f32.mrb[7].mxu1  ;;  %v791_v18 = vmul.f32 -1.442695, %v350_v13 }
 0x94d   :  { %928 = vpow2.f32 %v791_v18 }
 0x955   :  { %v927_v17 = vpop.eup %926 }
 0x956   :  { %360 = vrot.lane.b32.xlu1 %v927_v17, %s1088_s0  ;;  %v556_v17 = vld [vmem:[#allocation4 + $0xc] sm:$0x3] }
 0x957   :  { %v929_v19 = vpop.eup %928 }
 0x958   :  { %v354_v20 = vadd.f32 1.0, %v929_v19 }
 0x95a   :  { %930 = vrcp.f32 %v354_v20 }
 0x964   :  { %v931_v21 = vpop.eup %930 }
 0x965   :  { %v358_v24 = vmul.f32 %v931_v21, %v294_v5 }
 0x9c8   :  { %v361_v22 = vpop.permute.xlu1 %360 }
 0x9c9   :  { %v363_v23 = vmul.f32 %v931_v21, %v361_v22 }
 0x9cb   :  { %365 = vrot.lane.b32.xlu0 %v363_v23, %s1085_s7 }
 0xa3d   :  { %v366_v25 = vpop.permute.xlu0 %365 }
 0xa3e   :  { %v368_v26 = vadd.f32 %v366_v25, %v358_v24 }
 0xa40   :  { %932 = vtanh.f32 %v368_v26 }
 0xa4a   :  { %v933_v28 = vpop.eup %932 }
 0xa4b   :  { %371 = vrot.lane.b32.xlu1 %v933_v28, %s1088_s0 }
 0xa4f   :  { %400 = vrot.lane.b32.xlu1 %v368_v26, %s1092_s2 }
 0xabd   :  { %v372_v29 = vpop.permute.xlu1 %371 }
 0xabe   :  { %v1243_v30 = vmul.f32 %v931_v21, %v372_v29 }
 0xac0   :  { %394 = vrot.lane.b32.xlu0 %v1243_v30, %s1085_s7 }
 0xac1   :  { %v401_v31 = vpop.permute.xlu1 %400 }
 0xac2   :  { %403 = vst.msk [vmem:[#allocation3] sm:$0x3] %vm56_vm1, %v401_v31 }
 0xac9   :  { %v405_v32 = vld [vmem:[#allocation3] sm:$0x3] }
 0xaca   :  { %461 = vrot.lane.b32.xlu1 %v405_v32, %s1085_s7 }
 0xb32   :  { %v395_v33 = vpop.permute.xlu0 %394 }
 0xb33   :  { %398 = vst.msk [vmem:[#allocation2] sm:$0x3] %vm56_vm1, %v395_v33 }
 0xb3a   :  { %v404_v34 = vld [vmem:[#allocation2] sm:$0x3] }
 0xb3b   :  { %v408_v35 = vpack.c.bf16 %v404_v34, %v404_v34 }
 0xb3c   :  { %v462_v50 = vpop.permute.xlu1 %461 }
 0xb3d   :  { %861 = vmatmul.mubr.msk.bf16.vlgmr.msra.gmra.mrb[8].mxu0 %vm80_vm2, %v408_v35 }
 0xb3e   :  { %873 = vmatpush3.bf16.msra.mxu0 %v1166_v1  ;;  %876 = vmatprep.mubr.msk.bf16.mxu0 %vm1091_vm0, %v1090_v0 }
 0xb3f   :  { %874 = vmatprep.subr.bf16.mxu0 %v1090_v0 }
 0xb42   :  { %875 = vmatpush3.bf16.msra.mxu0 %v1169_v2 }
 0xc10   :  { %v446_v37 = vpop.f32.mrb[8].mxu0 }
 0xc11   :  { %v452_v38 = vadd.f32 %v446_v37, %v407_v36  ;;  %v862_v39 = vpop.f32.mrb[9].mxu0 }
 0xc12   :  { %v449_v40 = vpop.f32.mrb[10].mxu0 }
 0xc13   :  { %934 = vtanh.f32 %v452_v38  ;;  %v863_v41 = vpop.f32.mrb[11].mxu0  ;;  %v793_v43 = vmul.f32 -1.442695, %v452_v38  ;;  %v630_v40 = vld [vmem:[#allocation4 + $0xe] sm:$0x3] }
 0xc15   :  { %936 = vpow2.f32 %v793_v43 }
 0xc1d   :  { %v935_v42 = vpop.eup %934 }
 0xc1e   :  { %466 = vrot.lane.b32.xlu0 %v935_v42, %s1088_s0 }
 0xc1f   :  { %v937_v44 = vpop.eup %936 }
 0xc20   :  { %v456_v45 = vadd.f32 1.0, %v937_v44 }
 0xc22   :  { %938 = vrcp.f32 %v456_v45 }
 0xc2c   :  { %v939_v46 = vpop.eup %938 }
 0xc2d   :  { %v464_v51 = vmul.f32 %v939_v46, %v462_v50 }
 0xc90   :  { %v467_v47 = vpop.permute.xlu0 %466 }
 0xc91   :  { %v469_v49 = vmul.f32 %v939_v46, %v467_v47 }
 0xc93   :  { %471 = vrot.lane.b32.xlu0 %v469_v49, %s1085_s7 }
 0xd05   :  { %v472_v52 = vpop.permute.xlu0 %471 }
 0xd06   :  { %v474_v53 = vadd.f32 %v472_v52, %v464_v51 }
 0xd08   :  { %940 = vtanh.f32 %v474_v53 }
 0xd12   :  { %v941_v54 = vpop.eup %940 }
 0xd13   :  { %477 = vrot.lane.b32.xlu1 %v941_v54, %s1088_s0 }
 0xd85   :  { %v478_v55 = vpop.permute.xlu1 %477 }
 0xd86   :  { %v1259_v56 = vmul.f32 %v939_v46, %v478_v55 }
 0xd88   :  { %v483_v57 = vpack.c.bf16 %v1259_v56, %v1259_v56 }
 0xd8a   :  { %485 = vrot.lane.b32.xlu0 %v483_v57, %s1085_s7 }
 0xdfc   :  { %v486_v58 = vpop.permute.xlu0 %485 }
 0xdfd   :  { %869 = vmatmul.mubr.msk.bf16.vlgmr.msra.gmra.mrb[8].mxu1 %vm80_vm2, %v486_v58 }
 0xdfe   :  { %881 = vmatpush3.bf16.msra.mxu1 %v1166_v1  ;;  %884 = vmatprep.mubr.msk.bf16.mxu1 %vm1091_vm0, %v1090_v0 }
 0xdff   :  { %882 = vmatprep.subr.bf16.mxu1 %v1090_v0 }
 0xe02   :  { %883 = vmatpush3.bf16.msra.mxu1 %v1169_v2 }
 0xed0   :  { %v524_v60 = vpop.f32.mrb[8].mxu1 }
 0xed1   :  { %v530_v61 = vadd.f32 %v524_v60, %v482_v59  ;;  %v870_v62 = vpop.f32.mrb[9].mxu1 }
 0xed2   :  { %v527_v63 = vpop.f32.mrb[10].mxu1 }
 0xed3   :  { %942 = vtanh.f32 %v530_v61  ;;  %v871_v3 = vpop.f32.mrb[11].mxu1  ;;  %v795_v5 = vmul.f32 -1.442695, %v530_v61 }
 0xed5   :  { %944 = vpow2.f32 %v795_v5 }
 0xedd   :  { %v943_v4 = vpop.eup %942 }
 0xede   :  { %540 = vrot.lane.b32.xlu1 %v943_v4, %s1088_s0 }
 0xedf   :  { %v945_v1 = vpop.eup %944 }
 0xee0   :  { %v534_v6 = vadd.f32 1.0, %v945_v1 }
 0xee2   :  { %946 = vrcp.f32 %v534_v6 }
 0xeec   :  { %v947_v7 = vpop.eup %946 }
 0xeed   :  { %v538_v2 = vmul.f32 %v947_v7, %v474_v53 }
 0xf50   :  { %v541_v9 = vpop.permute.xlu1 %540 }
 0xf51   :  { %v543_v0 = vmul.f32 %v947_v7, %v541_v9 }
 0xf53   :  { %545 = vrot.lane.b32.xlu0 %v543_v0, %s1085_s7 }
 0xfc5   :  { %v546_v10 = vpop.permute.xlu0 %545 }
 0xfc6   :  { %v548_v11 = vadd.f32 %v546_v10, %v538_v2 }
 0xfc8   :  { %948 = vtanh.f32 %v548_v11 }
 0xfd2   :  { %v949_v12 = vpop.eup %948 }
 0xfd3   :  { %551 = vrot.lane.b32.xlu1 %v949_v12, %s1088_s0 }
0x1045   :  { %v552_v13 = vpop.permute.xlu1 %551 }
0x1046   :  { %v554_v14 = vmul.f32 %v947_v7, %v552_v13 }
0x1048   :  { %v557_v15 = vpack.c.bf16 %v554_v14, %v554_v14 }
0x104a   :  { %559 = vrot.lane.b32.xlu0 %v557_v15, %s1085_s7 }
0x10bc   :  { %v560_v16 = vpop.permute.xlu0 %559 }
0x10bd   :  { %877 = vmatmul.mubr.msk.bf16.vlgmr.msra.gmra.mrb[12].mxu0 %vm80_vm2, %v560_v16 }
0x1190   :  { %v598_v18 = vpop.f32.mrb[12].mxu0 }
0x1191   :  { %v604_v19 = vadd.f32 %v598_v18, %v556_v17  ;;  %v878_v20 = vpop.f32.mrb[13].mxu0 }
0x1192   :  { %v601_v21 = vpop.f32.mrb[14].mxu0 }
0x1193   :  { %950 = vtanh.f32 %v604_v19  ;;  %v879_v22 = vpop.f32.mrb[15].mxu0  ;;  %v797_v24 = vmul.f32 -1.442695, %v604_v19 }
0x1195   :  { %952 = vpow2.f32 %v797_v24 }
0x119d   :  { %v951_v23 = vpop.eup %950 }
0x119e   :  { %614 = vrot.lane.b32.xlu1 %v951_v23, %s1088_s0 }
0x119f   :  { %v953_v25 = vpop.eup %952 }
0x11a0   :  { %v608_v26 = vadd.f32 1.0, %v953_v25 }
0x11a2   :  { %954 = vrcp.f32 %v608_v26 }
0x11ac   :  { %v955_v28 = vpop.eup %954 }
0x11ad   :  { %v612_v32 = vmul.f32 %v955_v28, %v548_v11 }
0x1210   :  { %v615_v29 = vpop.permute.xlu1 %614 }
0x1211   :  { %v617_v31 = vmul.f32 %v955_v28, %v615_v29 }
0x1213   :  { %619 = vrot.lane.b32.xlu0 %v617_v31, %s1085_s7 }
0x1285   :  { %v620_v33 = vpop.permute.xlu0 %619 }
0x1286   :  { %v622_v34 = vadd.f32 %v620_v33, %v612_v32 }
0x1288   :  { %956 = vtanh.f32 %v622_v34 }
0x1292   :  { %v957_v35 = vpop.eup %956 }
0x1293   :  { %625 = vrot.lane.b32.xlu1 %v957_v35, %s1088_s0 }
0x1305   :  { %v626_v36 = vpop.permute.xlu1 %625 }
0x1306   :  { %v628_v37 = vmul.f32 %v955_v28, %v626_v36 }
0x1308   :  { %v631_v38 = vpack.c.bf16 %v628_v37, %v628_v37 }
0x130a   :  { %633 = vrot.lane.b32.xlu0 %v631_v38, %s1085_s7 }
0x137c   :  { %v634_v39 = vpop.permute.xlu0 %633 }
0x137d   :  { %885 = vmatmul.mubr.msk.bf16.vlgmr.msra.gmra.mrb[12].mxu1 %vm80_vm2, %v634_v39 }
0x1450   :  { %v672_v41 = vpop.f32.mrb[12].mxu1 }
0x1451   :  { %v678_v42 = vadd.f32 %v672_v41, %v630_v40  ;;  %v886_v43 = vpop.f32.mrb[13].mxu1 }
0x1452   :  { %v675_v44 = vpop.f32.mrb[14].mxu1 }
0x1453   :  { %958 = vtanh.f32 %v678_v42  ;;  %v887_v45 = vpop.f32.mrb[15].mxu1  ;;  %v799_v47 = vmul.f32 -1.442695, %v678_v42 }
0x1455   :  { %960 = vpow2.f32 %v799_v47 }
0x145d   :  { %v959_v46 = vpop.eup %958 }
0x145e   :  { %688 = vrot.lane.b32.xlu1 %v959_v46, %s1088_s0 }
0x145f   :  { %v961_v49 = vpop.eup %960 }
0x1460   :  { %v682_v50 = vadd.f32 1.0, %v961_v49 }
0x1462   :  { %962 = vrcp.f32 %v682_v50 }
0x146c   :  { %v963_v51 = vpop.eup %962 }
0x146d   :  { %v686_v54 = vmul.f32 %v963_v51, %v622_v34 }
0x14d0   :  { %v689_v52 = vpop.permute.xlu1 %688 }
0x14d1   :  { %v691_v53 = vmul.f32 %v963_v51, %v689_v52 }
0x14d3   :  { %693 = vrot.lane.b32.xlu0 %v691_v53, %s1085_s7 }
0x14d7   :  { %376 = vrot.lane.b32.xlu0 %v1197_v27, %s1085_s7 }
0x1545   :  { %v694_v55 = vpop.permute.xlu0 %693 }
0x1546   :  { %v696_v57 = vadd.f32 %v694_v55, %v686_v54 }
0x1548   :  { %964 = vtanh.f32 %v696_v57 }
0x1549   :  { %v377_v62 = vpop.permute.xlu0 %376 }
0x1552   :  { %v965_v58 = vpop.eup %964 }
0x1553   :  { %699 = vrot.lane.b32.xlu1 %v965_v58, %s1088_s0 }
0x1557   :  { %726 = vrot.lane.b32.xlu1 %v696_v57, %s1092_s2 }
0x155b   :  { %380 = vrot.lane.b32.xlu1 %v1212_v48, %s1088_s0 }
0x155f   :  { %708 = vrot.lane.b32.xlu1 %v554_v14, %s1088_s0 }
0x1563   :  { %712 = vrot.lane.b32.xlu1 %v628_v37, %s1092_s2 }
0x15c5   :  { %v700_v59 = vpop.permute.xlu1 %699 }
0x15c6   :  { %v702_v60 = vmul.f32 %v963_v51, %v700_v59 }
0x15c8   :  { %721 = vrot.lane.b32.xlu0 %v702_v60, %s1085_s7 }
0x15c9   :  { %v727_v27 = vpop.permute.xlu1 %726 }
0x15ca   :  { %729 = vst.msk [vmem:[#allocation3] sm:$0x3] %vm56_vm1, %v727_v27 }
0x15cc   :  { %704 = vrot.lane.b32.xlu0 %v1259_v56, %s1085_s7 }
0x15cd   :  { %v381_v48 = vpop.permute.xlu1 %380 }
0x15ce   :  { %v387_v6 = vsel %vm80_vm2, %v377_v62, %v381_v48 }
0x15d0   :  { %384 = vrot.lane.b32.xlu0 %v1227_v8, %s1092_s2 }
0x15d1   :  { %v735_v61 = vld [vmem:[#allocation3] sm:$0x3]  ;;  %v709_v63 = vpop.permute.xlu1 %708 }
0x15d2   :  { %736 = vst.msk [vmem:[#allocation12] sm:$0x3] %vm56_vm1, %v735_v61 }
0x15d5   :  { %v713_v5 = vpop.permute.xlu1 %712 }
0x163a   :  { %v722_v3 = vpop.permute.xlu0 %721 }
0x163b   :  { %724 = vst.msk [vmem:[#allocation2] sm:$0x3] %vm56_vm1, %v722_v3 }
0x163e   :  { %v705_v4 = vpop.permute.xlu0 %704 }
0x163f   :  { %v715_v56 = vsel %vm80_vm2, %v705_v4, %v709_v63 }
0x1640   :  { %v716_v8 = vsel %vm388_vm3, %v715_v56, %v713_v5 }
0x1641   :  { %v717_v1 = vsel %vm390_vm4, %v716_v8, %v702_v60 }
0x1642   :  { %v385_v7 = vpop.permute.xlu0 %384  ;;  %v733_v9 = vld [vmem:[#allocation2] sm:$0x3]  ;;  %719 = vst [vmem:[#allocation9 + $0x2] sm:$0x3] %v717_v1 }
0x1643   :  { %v389_v0 = vsel %vm388_vm3, %v387_v6, %v385_v7  ;;  %734 = vst.msk [vmem:[#allocation10] sm:$0x3] %vm56_vm1, %v733_v9 }
0x1644   :  { %v391_v2 = vsel %vm390_vm4, %v389_v0, %v1243_v30 }
0x1645   :  { %1021 = shalt.err (!%p1018_p6)
}
0x1646   :  { %s1022_s13 = scalar_lea.hbm %s1364_s5, 32 }
0x1647   :  { %p1023_p7 = scmp.ne.s32.totalorder %s1364_s5, %s1022_s13  ;;  %p1026_p8 = scmp.lt.u32.totalorder %s1022_s13, %s1364_s5 }
0x1649   :  { %p1028_p9 = pnand %p1026_p8, %p1023_p7 }
0x164b   :  { %1031 = shalt.err (!%p1028_p9)
}
0x164c   :  { %758 = dma.vmem_to_hbm [thread:$0]  %s756_s27, 32, %s1364_s5, [#allocation11]   ;;  %392 = vst [vmem:[#allocation9] sm:$0x3] %v391_v2 }
0x164d   :  { %s1032_s20 = scalar_lea.vmem %s1302_s29, 32  ;;  %p1037_p11 = scmp.lt.s32.totalorder %s1302_s29, %s1302_s29 }
0x164e   :  { %p1033_p10 = scmp.ne.s32.totalorder %s1302_s29, %s1032_s20  ;;  %p1038_p12 = scmp.lt.s32.totalorder %s1032_s20, %s1032_s20 }
0x1650   :  { %p1039_p13 = por %p1038_p12, %p1037_p11 }
0x1652   :  { %p1040_p0 = pnand %p1039_p13, %p1033_p10 }
0x1654   :  { %1043 = shalt.err (!%p1040_p0)
}
0x1655   :  { %s1044_s22 = scalar_lea.hbm %s1365_s6, 32 }
0x1656   :  { %p1045_p1 = scmp.ne.s32.totalorder %s1365_s6, %s1044_s22  ;;  %p1048_p2 = scmp.lt.u32.totalorder %s1044_s22, %s1365_s6 }
0x1658   :  { %p1050_p3 = pnand %p1048_p2, %p1045_p1 }
0x165a   :  { %1053 = shalt.err (!%p1050_p3)
}
0x165b   :  { %768 = dma.vmem_to_hbm [thread:$0]  %s1302_s29, 32, %s1365_s6, [#allocation11]  }
0x165c   :  { %s1054_s2 = scalar_lea.vmem %s1306_s9, 64  ;;  %p1059_p5 = scmp.lt.s32.totalorder %s1306_s9, %s1306_s9 }
0x165d   :  { %p1055_p4 = scmp.ne.s32.totalorder %s1306_s9, %s1054_s2  ;;  %p1060_p6 = scmp.lt.s32.totalorder %s1054_s2, %s1054_s2 }
0x165f   :  { %p1061_p7 = por %p1060_p6, %p1059_p5 }
0x1661   :  { %p1062_p8 = pnand %p1061_p7, %p1055_p4 }
0x1663   :  { %1065 = shalt.err (!%p1062_p8)
}
0x1664   :  { %s1066_s28 = scalar_lea.hbm %s1363_s4, 64 }
0x1665   :  { %p1067_p9 = scmp.ne.s32.totalorder %s1363_s4, %s1066_s28  ;;  %p1070_p10 = scmp.lt.u32.totalorder %s1066_s28, %s1363_s4 }
0x1667   :  { %p1072_p11 = pnand %p1070_p10, %p1067_p9 }
0x1669   :  { %1075 = shalt.err (!%p1072_p11)
}
0x166a   :  { %748 = dma.vmem_to_hbm [thread:$0]  %s1306_s9, 64, %s1363_s4, [#allocation6], %s1085_s7, %s1085_s7, %s1086_s8  }
0x166b   :  { %1080 = dma.done.wait [#allocation6], 64  }
0x166c   :  { %1081 = vsyncadd [#allocation6], 4294967232 }
0x166d   :  { %1082 = dma.done.wait [#allocation11], 64  }
0x166e   :  { %1083 = vsyncadd [#allocation11], 4294967232 }
0x166f   :  { %778 = vsyncpa [#allocation5], 1 }
0x1670   :  { %779 = vsyncpa [#allocation8], 1 }
0x1671   :  { %780 = vsyncpa [#allocation6], 1 }
0x1672   :  { %781 = vsyncpa [#allocation11], 1 }

</bundles_post_ra>
